<compile_context>
chip_gen: v7x
topology: tpu7x:2x2x1
jax: 0.10.0
libtpu: 0.0.40
codegen_flags: <defaults>
</compile_context>

<pallas_src>
import functools

import jax
import jax.numpy as jnp
from jax import lax
from jax.experimental import pallas as pl
from jax.experimental.pallas import tpu as pltpu

_EPS = 1e-5
_VMEM_BUDGET = 24 * 1024 * 1024   # target for double-buffered pipeline working set
_VMEM_LIMIT = 48 * 1024 * 1024    # explicit scoped-VMEM cap (above 16/32 MiB defaults, < v7x 64 MiB)


def _round_up(v, m):
    return (v + m - 1) // m * m


def _pick_tp(P, Kpad, Cpad):
    """Largest P-tile (multiple of 8) whose double-buffered working set fits the budget."""
    fixed = 2 * Kpad * Cpad * 2                       # bf16 weights, double buffered
    per_row = max(2 * (2 * Kpad + 4 * Cpad),          # kernel 1: patches bf16 + y f32 (x2 buffers)
                  2 * (4 * Cpad + 4 * Cpad))          # kernel 2: y f32 in + out f32 (x2 buffers)
    tp = (_VMEM_BUDGET - fixed) // per_row
    tp = max(8, min(2048, tp))
    tp = (tp // 8) * 8
    return min(tp, _round_up(P, 8))


def _gemm_stats_kernel(p_ref, w_ref, y_ref, s_ref):
    # p_ref: (TP, Kpad) bf16   w_ref: (Kpad, Cpad) bf16
    # y_ref: (TP, Cpad) f32    s_ref: (2, Cpad) f32 = per-tile [sum(y), sum(y*y)]
    y = jnp.dot(p_ref[...], w_ref[...], preferred_element_type=jnp.float32)
    y_ref[...] = y
    ssum = jnp.sum(y, axis=0, keepdims=True)
    ssq = jnp.sum(y * y, axis=0, keepdims=True)
    s_ref[...] = jnp.concatenate([ssum, ssq], axis=0)


def _norm_lrelu_kernel(y_ref, ms_ref, o_ref):
    # y_ref: (TP, Cpad) f32   ms_ref: (2, Cpad) f32 = [mean, inv_std]   o_ref: (TP, Cpad) f32
    y = y_ref[...]
    y_hat = (y - ms_ref[0:1, :]) * ms_ref[1:2, :]
    o_ref[...] = jnp.where(y_hat >= 0, y_hat, 0.2 * y_hat)


@functools.partial(jax.jit, static_argnames=("stride",))
def conv_instancenorm_leakyrelu(x, weight, bias, stride):
    """x: (N, C_in, H, W) f32. weight: (C_out, C_in, 4, 4). bias: (C_out,), cancelled by IN."""
    del bias  # InstanceNorm2d subtracts the per-channel mean -> conv bias cancels exactly.
    N, C_in, H, W = x.shape
    C_out = weight.shape[0]
    K, pad = 4, 1

    # Reflect pad in NHWC (glue; fuses under jit).
    x_nhwc = jnp.transpose(x, (0, 2, 3, 1))
    xp = jnp.pad(x_nhwc, ((0, 0), (pad, pad), (pad, pad), (0, 0)), mode="reflect")
    Hp, Wp = H + 2 * pad, W + 2 * pad
    Hout = (Hp - K) // stride + 1
    Wout = (Wp - K) // stride + 1
    P = Hout * Wout
    Kdim = C_in * K * K

    # im2col directly in (N, P, Kdim) layout (no large post-hoc transpose):
    # feature index = c*16 + kh*4 + kw, matching weight.reshape(C_out, Kdim).
    cols = []
    for kh in range(K):
        for kw in range(K):
            cols.append(xp[:, kh:kh + stride * Hout:stride,
                           kw:kw + stride * Wout:stride, :])     # (N, Hout, Wout, C_in)
    patches = jnp.stack(cols, axis=-1)                           # (N, Hout, Wout, C_in, 16)
    patches = patches.reshape(N, P, Kdim)

    # MXU / lane alignment: pad K and C_out to multiples of 128, tile the P axis.
    Kpad = _round_up(Kdim, 128)
    Cpad = _round_up(C_out, 128)
    TP = _pick_tp(P, Kpad, Cpad)
    nP = pl.cdiv(P, TP)
    Ppad = nP * TP

    patches = jnp.pad(patches, ((0, 0), (0, Ppad - P), (0, Kpad - Kdim))).astype(jnp.bfloat16)
    w_mat = jnp.pad(weight.reshape(C_out, Kdim).T,
                    ((0, Kpad - Kdim), (0, Cpad - C_out))).astype(jnp.bfloat16)
    # NOTE: w_mat has a constant index_map; pl.Buffered(1) would save one VMEM buffer but is
    # left at the default double-buffering for portability.

    # Kernel 1: conv GEMM + one-pass per-tile sum / sum-of-squares.
    y_raw, part_stats = pl.pallas_call(
        _gemm_stats_kernel,
        out_shape=(jax.ShapeDtypeStruct((N, Ppad, Cpad), jnp.float32),
                   jax.ShapeDtypeStruct((N, nP, 2, Cpad), jnp.float32)),
        grid_spec=pltpu.PrefetchScalarGridSpec(
            num_scalar_prefetch=0,
            grid=(N, nP),
            in_specs=[
                pl.BlockSpec((pl.Squeezed(), TP, Kpad), lambda n, p: (n, p, 0)),
                pl.BlockSpec((Kpad, Cpad), lambda n, p: (0, 0)),
            ],
            out_specs=[
                pl.BlockSpec((pl.Squeezed(), TP, Cpad), lambda n, p: (n, p, 0)),
                pl.BlockSpec((pl.Squeezed(), pl.Squeezed(), 2, Cpad),
                             lambda n, p: (n, p, 0, 0)),
            ],
        ),
        compiler_params=pltpu.CompilerParams(
            dimension_semantics=("parallel", "parallel"),
            vmem_limit_bytes=_VMEM_LIMIT),
    )(patches, w_mat)

    # Tiny cross-tile reduction (padded P rows / padded channels contribute exact zeros).
    stats = jnp.sum(part_stats, axis=1)                          # (N, 2, Cpad)
    mean = stats[:, 0] / P
    var = jnp.maximum(stats[:, 1] / P - mean * mean, 0.0)        # biased variance, f32 accumulation
    inv_std = lax.rsqrt(var + _EPS)
    ms = jnp.stack([mean, inv_std], axis=1)                      # (N, 2, Cpad)

    # Kernel 2: normalize + LeakyReLU(0.2), fully parallel elementwise pass.
    out_flat = pl.pallas_call(
        _norm_lrelu_kernel,
        out_shape=jax.ShapeDtypeStruct((N, Ppad, Cpad), jnp.float32),
        grid_spec=pltpu.PrefetchScalarGridSpec(
            num_scalar_prefetch=0,
            grid=(N, nP),
            in_specs=[
                pl.BlockSpec((pl.Squeezed(), TP, Cpad), lambda n, p: (n, p, 0)),
                pl.BlockSpec((pl.Squeezed(), 2, Cpad), lambda n, p: (n, 0, 0)),
            ],
            out_specs=pl.BlockSpec((pl.Squeezed(), TP, Cpad), lambda n, p: (n, p, 0)),
        ),
        compiler_params=pltpu.CompilerParams(
            dimension_semantics=("parallel", "parallel"),
            vmem_limit_bytes=_VMEM_LIMIT),
    )(y_raw, ms)

    out = out_flat[:, :P, :C_out].reshape(N, Hout, Wout, C_out)
    return jnp.transpose(out, (0, 3, 1, 2))                      # NCHW


def _reference(x, weight, bias, stride):
    """Pure-JAX f32 reference (keeps the conv bias to prove it cancels under InstanceNorm)."""
    pad = 1
    xp = jnp.pad(x, ((0, 0), (0, 0), (pad, pad), (pad, pad)), mode="reflect")
    y = lax.conv_general_dilated(
        xp, weight, window_strides=(stride, stride), padding="VALID",
        dimension_numbers=("NCHW", "OIHW", "NCHW"))
    y = y + bias.reshape(1, -1, 1, 1)
    mean = jnp.mean(y, axis=(2, 3), keepdims=True)
    var = jnp.mean((y - mean) ** 2, axis=(2, 3), keepdims=True)
    y_hat = (y - mean) * lax.rsqrt(var + _EPS)
    return jnp.where(y_hat >= 0, y_hat, 0.2 * y_hat)


def _check(N, C_in, H, W, C_out, stride, key):
    k_x, k_w, k_b = jax.random.split(key, 3)
    x = jax.random.normal(k_x, (N, C_in, H, W), dtype=jnp.float32)
    weight = jax.random.normal(k_w, (C_out, C_in, 4, 4), dtype=jnp.float32) * 0.1
    bias = jax.random.normal(k_b, (C_out,), dtype=jnp.float32) * 0.1

    out = jax.block_until_ready(conv_instancenorm_leakyrelu(x, weight, bias, stride))
    ref = jax.block_until_ready(_reference(x, weight, bias, stride))
    assert out.shape == ref.shape, (out.shape, ref.shape)
    # bf16 MXU operands vs. full-f32 reference -> modest tolerance (norm keeps values O(1)).
    assert jnp.allclose(out, ref, atol=3e-2, rtol=3e-2), "mismatch vs reference"


if __name__ == "__main__":
    key = jax.random.PRNGKey(0)
    k1, k2 = jax.random.split(key)
    # Small shapes matching the module spec (single P tile, nP == 1).
    _check(N=2, C_in=4, H=16, W=16, C_out=8, stride=2, key=k1)
    # Larger spatial size: exercises P tiling (nP > 1) and P/K zero-padding paths.
    _check(N=1, C_in=3, H=64, W=64, C_out=8, stride=1, key=k2)
    print("KERNEL_OK")
</pallas_src>

<mosaic_0001>
module attributes {stable_mosaic.version = 11 : i64} {
  func.func @_gemm_stats_kernel(%arg0: i32, %arg1: i32, %arg2: memref<1x64x128xbf16, #tpu.memory_space<vmem>>, %arg3: memref<128x128xbf16, #tpu.memory_space<vmem>>, %arg4: memref<1x64x128xf32, #tpu.memory_space<vmem>>, %arg5: memref<1x1x2x128xf32, #tpu.memory_space<vmem>>) attributes {dimension_semantics = [#tpu.dimension_semantics<parallel>, #tpu.dimension_semantics<parallel>], iteration_bounds = array<i64: 2, 1>, scalar_prefetch = 0 : i64, scratch_operands = 0 : i64, tpu.core_type = #tpu.core_type<tc>, window_params = [{transform_indices = @transform_0, window_bounds = array<i64: 1, 64, 128>}, {pipeline_mode = #tpu.pipeline_mode<synchronous>, transform_indices = @transform_1, window_bounds = array<i64: 128, 128>}, {transform_indices = @transform_2, window_bounds = array<i64: 1, 64, 128>}, {transform_indices = @transform_3, window_bounds = array<i64: 1, 1, 2, 128>}]} {
    %c0 = arith.constant 0 : index
    %c0_0 = arith.constant 0 : index
    %c0_1 = arith.constant 0 : index
    %0 = vector.load %arg2[%c0, %c0_0, %c0_1] : memref<1x64x128xbf16, #tpu.memory_space<vmem>>, vector<1x64x128xbf16>
    %1 = vector.shape_cast %0 : vector<1x64x128xbf16> to vector<64x128xbf16>
    %c0_2 = arith.constant 0 : index
    %c0_3 = arith.constant 0 : index
    %2 = vector.load %arg3[%c0_2, %c0_3] : memref<128x128xbf16, #tpu.memory_space<vmem>>, vector<128x128xbf16>
    %cst = arith.constant dense<0.000000e+00> : vector<64x128xf32>
    %3 = tpu.matmul %1, %2, %cst {dimension_numbers = #tpu.dot_dimension_numbers<[1], [0], [0], [1], [0, 0, 1, 1], [], []>} : vector<64x128xbf16>, vector<128x128xbf16>, vector<64x128xf32> -> vector<64x128xf32>
    %c0_4 = arith.constant 0 : index
    %c0_5 = arith.constant 0 : index
    %c0_6 = arith.constant 0 : index
    %4 = vector.load %arg4[%c0_4, %c0_5, %c0_6] : memref<1x64x128xf32, #tpu.memory_space<vmem>>, vector<1x64x128xf32>
    %5 = vector.shape_cast %4 : vector<1x64x128xf32> to vector<64x128xf32>
    %6 = vector.shape_cast %3 : vector<64x128xf32> to vector<1x64x128xf32>
    tpu.vector_store %arg4[%c0_4, %c0_5, %c0_6], %6 {strides = array<i32>} : memref<1x64x128xf32, #tpu.memory_space<vmem>>, vector<1x64x128xf32>,
    %cst_7 = arith.constant dense<0.000000e+00> : vector<128xf32>
    %7 = vector.multi_reduction <add>, %3, %cst_7 [0] : vector<64x128xf32> to vector<128xf32>
    %8 = vector.shape_cast %7 : vector<128xf32> to vector<1x128xf32>
    %9 = arith.mulf %3, %3 : vector<64x128xf32>
    %cst_8 = arith.constant dense<0.000000e+00> : vector<128xf32>
    %10 = vector.multi_reduction <add>, %9, %cst_8 [0] : vector<64x128xf32> to vector<128xf32>
    %11 = vector.shape_cast %10 : vector<128xf32> to vector<1x128xf32>
    %12 = tpu.concatenate %8, %11 in 0 : vector<1x128xf32>, vector<1x128xf32> -> vector<2x128xf32>
    %c0_9 = arith.constant 0 : index
    %c0_10 = arith.constant 0 : index
    %c0_11 = arith.constant 0 : index
    %c0_12 = arith.constant 0 : index
    %13 = vector.load %arg5[%c0_9, %c0_10, %c0_11, %c0_12] : memref<1x1x2x128xf32, #tpu.memory_space<vmem>>, vector<1x1x2x128xf32>
    %14 = vector.shape_cast %13 : vector<1x1x2x128xf32> to vector<2x128xf32>
    %15 = vector.shape_cast %12 : vector<2x128xf32> to vector<1x1x2x128xf32>
    tpu.vector_store %arg5[%c0_9, %c0_10, %c0_11, %c0_12], %15 {strides = array<i32>} : memref<1x1x2x128xf32, #tpu.memory_space<vmem>>, vector<1x1x2x128xf32>,
    return
  }
  func.func @transform_0(%arg0: i32, %arg1: i32) -> (i32, i32, i32) {
    %c0_i32 = arith.constant 0 : i32
    %c0_i32_0 = arith.constant 0 : i32
    return %arg0, %arg1, %c0_i32 : i32, i32, i32
  }
  func.func @transform_1(%arg0: i32, %arg1: i32) -> (i32, i32) {
    %c0_i32 = arith.constant 0 : i32
    %c0_i32_0 = arith.constant 0 : i32
    %c0_i32_1 = arith.constant 0 : i32
    return %c0_i32, %c0_i32_0 : i32, i32
  }
  func.func @transform_2(%arg0: i32, %arg1: i32) -> (i32, i32, i32) {
    %c0_i32 = arith.constant 0 : i32
    %c0_i32_0 = arith.constant 0 : i32
    return %arg0, %arg1, %c0_i32 : i32, i32, i32
  }
  func.func @transform_3(%arg0: i32, %arg1: i32) -> (i32, i32, i32, i32) {
    %c0_i32 = arith.constant 0 : i32
    %c0_i32_0 = arith.constant 0 : i32
    %c0_i32_1 = arith.constant 0 : i32
    return %arg0, %arg1, %c0_i32, %c0_i32_0 : i32, i32, i32, i32
  }
}

module attributes {stable_mosaic.version = 11 : i64} {
  func.func @_norm_lrelu_kernel(%arg0: i32, %arg1: i32, %arg2: memref<1x64x128xf32, #tpu.memory_space<vmem>>, %arg3: memref<1x2x128xf32, #tpu.memory_space<vmem>>, %arg4: memref<1x64x128xf32, #tpu.memory_space<vmem>>) attributes {dimension_semantics = [#tpu.dimension_semantics<parallel>, #tpu.dimension_semantics<parallel>], iteration_bounds = array<i64: 2, 1>, scalar_prefetch = 0 : i64, scratch_operands = 0 : i64, tpu.core_type = #tpu.core_type<tc>, window_params = [{transform_indices = @transform_0, window_bounds = array<i64: 1, 64, 128>}, {transform_indices = @transform_1, window_bounds = array<i64: 1, 2, 128>}, {transform_indices = @transform_2, window_bounds = array<i64: 1, 64, 128>}]} {
    %c0 = arith.constant 0 : index
    %c0_0 = arith.constant 0 : index
    %c0_1 = arith.constant 0 : index
    %0 = vector.load %arg2[%c0, %c0_0, %c0_1] : memref<1x64x128xf32, #tpu.memory_space<vmem>>, vector<1x64x128xf32>
    %1 = vector.shape_cast %0 : vector<1x64x128xf32> to vector<64x128xf32>
    %c0_2 = arith.constant 0 : index
    %c0_3 = arith.constant 0 : index
    %c0_4 = arith.constant 0 : index
    %2 = vector.load %arg3[%c0_2, %c0_3, %c0_4] : memref<1x2x128xf32, #tpu.memory_space<vmem>>, vector<1x1x128xf32>
    %3 = vector.shape_cast %2 : vector<1x1x128xf32> to vector<1x128xf32>
    %4 = vector.broadcast %3 : vector<1x128xf32> to vector<64x128xf32>
    %5 = arith.subf %1, %4 : vector<64x128xf32>
    %c0_5 = arith.constant 0 : index
    %c1 = arith.constant 1 : index
    %c0_6 = arith.constant 0 : index
    %6 = vector.load %arg3[%c0_5, %c1, %c0_6] : memref<1x2x128xf32, #tpu.memory_space<vmem>>, vector<1x1x128xf32>
    %7 = vector.shape_cast %6 : vector<1x1x128xf32> to vector<1x128xf32>
    %8 = vector.broadcast %7 : vector<1x128xf32> to vector<64x128xf32>
    %9 = arith.mulf %5, %8 : vector<64x128xf32>
    %cst = arith.constant 0.000000e+00 : f32
    %10 = vector.broadcast %cst : f32 to vector<64x128xf32>
    %11 = arith.cmpf oge, %9, %10 : vector<64x128xf32>
    %cst_7 = arith.constant 2.000000e-01 : f32
    %12 = vector.broadcast %cst_7 : f32 to vector<64x128xf32>
    %13 = arith.mulf %12, %9 : vector<64x128xf32>
    %14 = arith.select %11, %9, %13 : vector<64x128xi1>, vector<64x128xf32>
    %c0_8 = arith.constant 0 : index
    %c0_9 = arith.constant 0 : index
    %c0_10 = arith.constant 0 : index
    %15 = vector.load %arg4[%c0_8, %c0_9, %c0_10] : memref<1x64x128xf32, #tpu.memory_space<vmem>>, vector<1x64x128xf32>
    %16 = vector.shape_cast %15 : vector<1x64x128xf32> to vector<64x128xf32>
    %17 = vector.shape_cast %14 : vector<64x128xf32> to vector<1x64x128xf32>
    tpu.vector_store %arg4[%c0_8, %c0_9, %c0_10], %17 {strides = array<i32>} : memref<1x64x128xf32, #tpu.memory_space<vmem>>, vector<1x64x128xf32>,
    return
  }
  func.func @transform_0(%arg0: i32, %arg1: i32) -> (i32, i32, i32) {
    %c0_i32 = arith.constant 0 : i32
    %c0_i32_0 = arith.constant 0 : i32
    return %arg0, %arg1, %c0_i32 : i32, i32, i32
  }
  func.func @transform_1(%arg0: i32, %arg1: i32) -> (i32, i32, i32) {
    %c0_i32 = arith.constant 0 : i32
    %c0_i32_0 = arith.constant 0 : i32
    %c0_i32_1 = arith.constant 0 : i32
    return %arg0, %c0_i32, %c0_i32_0 : i32, i32, i32
  }
  func.func @transform_2(%arg0: i32, %arg1: i32) -> (i32, i32, i32) {
    %c0_i32 = arith.constant 0 : i32
    %c0_i32_0 = arith.constant 0 : i32
    return %arg0, %arg1, %c0_i32 : i32, i32, i32
  }
}

</mosaic_0001>

<bundles_post_ra>
// kernel: conv_instancenorm_leakyrelu.3
= control target key start
LH: loop header
LB: loop body
LE: loop exit
PB: predicated region body
PF: predicated region fallthrough
CT: control target
= control target key end

     0   :  { %s444_s9 = smov 0   ;;  %s446_s10 = smov 0   ;;  %s490_s0 = inlined_call_operand.vmem [shape: f32[2,64,128], index: 0, kind: input, shape index: {}]   ;;  %s491_s1 = inlined_call_operand.vmem [shape: f32[2,2,128], index: 1, kind: input, shape index: {}]   ;;  %s492_s2 = inlined_call_operand.vmem [shape: f32[2,64,128], index: 2, kind: output, shape index: {}]  }
   0x1   :  { %s448_s11 = smov 0  }
   0x2 LB: > { %s24_s12 = sadd.s32 1, %s423_s10  ;;  %p369_p0 = scmp.ge.s32.totalorder %s427_s11, 1  ;;  %s427_s11 = sphi %s448_s11, %s12_s11   ;;  %s423_s10 = sphi %s446_s10, %s494_s10   ;;  %s419_s9 = sphi %s444_s9, %s493_s9  }
   0x3   : > { %p26_p1 = scmp.ge.s32.totalorder %s24_s12, 2  ;;  %p142_p2 = scmp.lt.s32.totalorder %s427_s11, 3 }
   0x5   : > { %s496_s12 = smov (%p26_p1, %s24_s12), 0  ;;  %p143_p3 = pnand %p369_p0, %p142_p2 }
   0x6   : > { %p177_p4 = scmp.lt.s32.totalorder (!%p143_p3), %s419_s9, 1 }
   0x7   : > { %146 = sbr.rel (%p143_p3) target bundleno = 33 (0x21), region = 28 }
   0xe   : > { %s498_s9 = smov (!%p177_p4, %s419_s9), 1 }
   0xf   : > { %s379_s13 = sshll.u32 %s498_s9, 6  ;;  %s372_s14 = sshll.u32 %s498_s9, 1 }
  0x10   : > { %s184_s17 = scalar_lea.vmem %s490_s0, %s379_s13  ;;  %s189_s20 = scalar_lea.vmem %s491_s1, %s372_s14 }
  0x11   : > { %v200_v0 = vld [vmem:[%s184_s17] sm:$0xff]  ;;  %v201_v4 = vld [vmem:[%s184_s17 + $0x8] sm:$0xff]  ;;  %v202_v5 = vld [vmem:[%s184_s17 + $0x10] sm:$0xff]  ;;  %s471_s23 = scalar_lea.vmem %s492_s2, %s379_s13 }
  0x12   : > { %v375_v1 = vld [vmem:[%s189_s20] ss:$0 sm:$0xff]  ;;  %v376_v2 = vld [vmem:[%s189_s20 + $0x1] ss:$0 sm:$0xff]  ;;  %v203_v6 = vld [vmem:[%s184_s17 + $0x18] sm:$0xff] }
  0x13   : > { %v213_v3 = vsub.f32 %v200_v0, %v375_v1  ;;  %v214_v7 = vsub.f32 %v201_v4, %v375_v1  ;;  %v215_v8 = vsub.f32 %v202_v5, %v375_v1  ;;  %v216_v9 = vsub.f32 %v203_v6, %v375_v1  ;;  %v204_v10 = vld [vmem:[%s184_s17 + $0x20] sm:$0xff]  ;;  %v205_v11 = vld [vmem:[%s184_s17 + $0x28] sm:$0xff]  ;;  %v206_v12 = vld [vmem:[%s184_s17 + $0x30] sm:$0xff] }
  0x14   : > { %v217_v14 = vsub.f32 %v204_v10, %v375_v1  ;;  %v218_v15 = vsub.f32 %v205_v11, %v375_v1  ;;  %v219_v16 = vsub.f32 %v206_v12, %v375_v1  ;;  %v207_v17 = vld [vmem:[%s184_s17 + $0x38] sm:$0xff] }
  0x15   : > { %v226_v13 = vmul.f32 %v376_v2, %v213_v3  ;;  %v227_v18 = vmul.f32 %v376_v2, %v214_v7  ;;  %v228_v19 = vmul.f32 %v376_v2, %v215_v8  ;;  %v229_v20 = vmul.f32 %v376_v2, %v216_v9 }
  0x16   : > { %v220_v21 = vsub.f32 %v207_v17, %v375_v1  ;;  %v230_v23 = vmul.f32 %v376_v2, %v217_v14  ;;  %v231_v24 = vmul.f32 %v376_v2, %v218_v15  ;;  %v232_v34 = vmul.f32 %v376_v2, %v219_v16 }
  0x17   : > { %vm234_vm0 = vcmp.ge.f32.partialorder %v226_v13, 0.0  ;;  %v242_v22 = vmul.f32 0.2, %v226_v13  ;;  %vm235_vm1 = vcmp.ge.f32.partialorder %v227_v18, 0.0  ;;  %v243_v25 = vmul.f32 0.2, %v227_v18 }
  0x18   : > { %vm236_vm2 = vcmp.ge.f32.partialorder %v228_v19, 0.0  ;;  %v244_v26 = vmul.f32 0.2, %v228_v19  ;;  %vm237_vm3 = vcmp.ge.f32.partialorder %v229_v20, 0.0  ;;  %v245_v28 = vmul.f32 0.2, %v229_v20 }
  0x19   : > { %v250_v27 = vsel %vm234_vm0, %v226_v13, %v242_v22  ;;  %vm238_vm4 = vcmp.ge.f32.partialorder %v230_v23, 0.0  ;;  %v251_v29 = vsel %vm235_vm1, %v227_v18, %v243_v25  ;;  %v246_v31 = vmul.f32 0.2, %v230_v23 }
  0x1a   : > { %258 = vst [vmem:[%s471_s23] sm:$0xff] %v250_v27  ;;  %v252_v30 = vsel %vm236_vm2, %v228_v19, %v244_v26  ;;  %vm239_vm5 = vcmp.ge.f32.partialorder %v231_v24, 0.0  ;;  %259 = vst [vmem:[%s471_s23 + $0x8] sm:$0xff] %v251_v29  ;;  %v253_v32 = vsel %vm237_vm3, %v229_v20, %v245_v28  ;;  %v247_v33 = vmul.f32 0.2, %v231_v24 }
  0x1b   : > { %260 = vst [vmem:[%s471_s23 + $0x10] sm:$0xff] %v252_v30  ;;  %v233_v35 = vmul.f32 %v376_v2, %v220_v21  ;;  %261 = vst [vmem:[%s471_s23 + $0x18] sm:$0xff] %v253_v32  ;;  %v254_v36 = vsel %vm238_vm4, %v230_v23, %v246_v31  ;;  %vm240_vm6 = vcmp.ge.f32.partialorder %v232_v34, 0.0  ;;  %v248_v38 = vmul.f32 0.2, %v232_v34 }
  0x1c   : > { %262 = vst [vmem:[%s471_s23 + $0x20] sm:$0xff] %v254_v36  ;;  %v255_v37 = vsel %vm239_vm5, %v231_v24, %v247_v33 }
  0x1d   : > { %vm241_vm7 = vcmp.ge.f32.partialorder %v233_v35, 0.0  ;;  %263 = vst [vmem:[%s471_s23 + $0x28] sm:$0xff] %v255_v37  ;;  %v249_v39 = vmul.f32 0.2, %v233_v35  ;;  %v256_v40 = vsel %vm240_vm6, %v232_v34, %v248_v38 }
  0x1e   : > { %264 = vst [vmem:[%s471_s23 + $0x30] sm:$0xff] %v256_v40 }
  0x1f   : > { %v257_v41 = vsel %vm241_vm7, %v233_v35, %v249_v39 }
  0x20   : > { %265 = vst [vmem:[%s471_s23 + $0x38] sm:$0xff] %v257_v41 }
  0x21 PF: > { %s12_s11 = sadd.s32 1, %s427_s11   ;;  %s493_s9 = smov %s423_s10 }
  0x22   : > { %p9_p5 = scmp.ge.s32.totalorder %s12_s11, 4   ;;  %s494_s10 = smov %s496_s12 }
  0x24   :  { %11 = sbr.rel (!%p9_p5) target bundleno = 2 (0x2), region = 61 }

// kernel: conv_instancenorm_leakyrelu.2
= control target key start
LH: loop header
LB: loop body
LE: loop exit
PB: predicated region body
PF: predicated region fallthrough
CT: control target
= control target key end

     0   :  { %s722_s12 = smov 0   ;;  %s724_s13 = smov 0   ;;  %s793_s0 = inlined_call_operand.vmem [shape: bf16[2,64,128], index: 0, kind: input, shape index: {}]   ;;  %s794_s1 = inlined_call_operand.vmem [shape: bf16[128,128], index: 1, kind: input, shape index: {}]   ;;  %s795_s2 = inlined_call_operand.vmem [shape: f32[2,64,128], index: 2, kind: output, shape index: {0}]   ;;  %s796_s3 = inlined_call_operand.vmem [shape: f32[2,1,2,128], index: 3, kind: output, shape index: {1}]  }
   0x1   :  { %s726_s14 = smov 0  }
   0x2 LB: > { %s26_s15 = sadd.s32 1, %s696_s13  ;;  %p568_p0 = scmp.ge.s32.totalorder %s700_s14, 1  ;;  %s700_s14 = sphi %s726_s14, %s14_s14   ;;  %s696_s13 = sphi %s724_s13, %s798_s13   ;;  %s692_s12 = sphi %s722_s12, %s797_s12  }
   0x3   : > { %p28_p1 = scmp.ge.s32.totalorder %s26_s15, 2  ;;  %p163_p2 = scmp.lt.s32.totalorder %s700_s14, 3 }
   0x5   : > { %s800_s15 = smov (%p28_p1, %s26_s15), 0  ;;  %p164_p3 = pnand %p568_p0, %p163_p2 }
   0x6   : > { %v666_v0 = vld [vmem:[%s794_s1] sm:$0xff] (!%p164_p3)   ;;  %p203_p4 = scmp.lt.s32.totalorder (!%p164_p3), %s692_s12, 1  ;;  %v667_v1 = vld [vmem:[%s794_s1 + $0x8] sm:$0xff] (!%p164_p3)   ;;  %v668_v2 = vld [vmem:[%s794_s1 + $0x10] sm:$0xff] (!%p164_p3)   ;;  %vm433_vm0 = vcmask (!%p164_p3), 1040384  }
   0x7   : > { %167 = sbr.rel (%p164_p3) target bundleno = 284 (0x11c), region = 28  ;;  %602 = vmatprep.subr.bf16.mxu0 (!%p164_p3), %v666_v0  ;;  %626 = vmatprep.subr.bf16.mxu1 (!%p164_p3), %v666_v0  ;;  %v669_v3 = vld [vmem:[%s794_s1 + $0x18] sm:$0xff] (!%p164_p3)   ;;  %v670_v6 = vld [vmem:[%s794_s1 + $0x20] sm:$0xff] (!%p164_p3)   ;;  %v671_v7 = vld [vmem:[%s794_s1 + $0x28] sm:$0xff] (!%p164_p3)  }
   0x8   : > { %603 = vmatpush3.bf16.msra.mxu0 (!%p164_p3), %v666_v0  ;;  %634 = vmatpush3.bf16.msra.mxu1 (!%p164_p3), %v666_v0  ;;  %v672_v8 = vld [vmem:[%s794_s1 + $0x30] sm:$0xff] (!%p164_p3)   ;;  %v673_v9 = vld [vmem:[%s794_s1 + $0x38] sm:$0xff] (!%p164_p3)  }
   0x9   : > { %604 = vmatprep.subr.bf16.mxu0 (!%p164_p3), %v667_v1  ;;  %627 = vmatprep.subr.bf16.mxu1 (!%p164_p3), %v667_v1 }
   0xc   : > { %605 = vmatpush3.bf16.msra.mxu0 (!%p164_p3), %v667_v1  ;;  %635 = vmatpush3.bf16.msra.mxu1 (!%p164_p3), %v667_v1 }
   0xd   : > { %606 = vmatprep.subr.bf16.mxu0 (!%p164_p3), %v668_v2  ;;  %628 = vmatprep.subr.bf16.mxu1 (!%p164_p3), %v668_v2 }
   0xe   : > { %s802_s12 = smov (!%p203_p4, %s692_s12), 1 }
   0xf   : > { %s588_s22 = sshll.u32 %s802_s12, 5  ;;  %s589_s9 = sshll.u32 %s802_s12, 6 }
  0x10   : > { %s755_s25 = scalar_lea.vmem %s793_s0, %s588_s22  ;;  %607 = vmatpush3.bf16.msra.mxu0 %v668_v2  ;;  %636 = vmatpush3.bf16.msra.mxu1 %v668_v2  ;;  %s220_s16 = scalar_lea.vmem %s795_s2, %s589_s9 }
  0x11   : > { %v674_v4 = vld [vmem:[%s755_s25] sm:$0xff]   ;;  %v676_v5 = vld [vmem:[%s755_s25 + $0x10] sm:$0xff]   ;;  %608 = vmatprep.subr.bf16.mxu0 %v669_v3  ;;  %629 = vmatprep.subr.bf16.mxu1 %v669_v3  ;;  %v675_v10 = vld [vmem:[%s755_s25 + $0x8] sm:$0xff]   ;;  %s573_s17 = sshll.u32 %s802_s12, 1 }
  0x12   : > { %618 = vmatprep.mubr.bf16.mxu0 %v674_v4  ;;  %622 = vmatprep.mubr.bf16.mxu1 %v676_v5  ;;  %v677_v11 = vld [vmem:[%s755_s25 + $0x18] sm:$0xff]   ;;  %s228_s20 = scalar_lea.vmem %s796_s3, %s573_s17 }
  0x14   : > { %609 = vmatpush3.bf16.msra.mxu0 %v669_v3  ;;  %637 = vmatpush3.bf16.msra.mxu1 %v669_v3 }
  0x15   : > { %610 = vmatprep.subr.bf16.mxu0 %v670_v6  ;;  %630 = vmatprep.subr.bf16.mxu1 %v670_v6 }
  0x18   : > { %611 = vmatpush3.bf16.msra.mxu0 %v670_v6  ;;  %638 = vmatpush3.bf16.msra.mxu1 %v670_v6 }
  0x19   : > { %612 = vmatprep.subr.bf16.mxu0 %v671_v7  ;;  %631 = vmatprep.subr.bf16.mxu1 %v671_v7 }
  0x1c   : > { %613 = vmatpush3.bf16.msra.mxu0 %v671_v7  ;;  %639 = vmatpush3.bf16.msra.mxu1 %v671_v7 }
  0x1d   : > { %614 = vmatprep.subr.bf16.mxu0 %v672_v8  ;;  %632 = vmatprep.subr.bf16.mxu1 %v672_v8 }
  0x20   : > { %615 = vmatpush3.bf16.msra.mxu0 %v672_v8  ;;  %640 = vmatpush3.bf16.msra.mxu1 %v672_v8 }
  0x21   : > { %616 = vmatprep.subr.bf16.mxu0 %v673_v9  ;;  %633 = vmatprep.subr.bf16.mxu1 %v673_v9 }
  0x24   : > { %617 = vmatpush3.bf16.msra.mxu0 %v673_v9  ;;  %641 = vmatpush3.bf16.msra.mxu1 %v673_v9 }
  0x27   : > { %619 = vmatmul.mubr.bf16.vlgmr.msra.gmra.mrb[0].mxu0 %v675_v10  ;;  %623 = vmatmul.mubr.bf16.vlgmr.msra.gmra.mrb[0].mxu1 %v677_v11 }
  0xfa   : > { %v620_v12 = vpop.f32.mrb[0].mxu0  ;;  %v624_v13 = vpop.f32.mrb[0].mxu1 }
  0xfb   : > { %393 = vst [vmem:[%s220_s16 + $0x10] sm:$0xff] %v620_v12  ;;  %v360_v14 = vpop.f32.mrb[1].mxu0  ;;  %397 = vst [vmem:[%s220_s16 + $0x30] sm:$0xff] %v624_v13  ;;  %v376_v15 = vpop.f32.mrb[1].mxu1  ;;  %v414_v23 = vmul.f32 %v620_v12, %v620_v12  ;;  %v418_v35 = vmul.f32 %v624_v13, %v624_v13 }
  0xfc   : > { %391 = vst [vmem:[%s220_s16] sm:$0xff] %v360_v14  ;;  %v621_v16 = vpop.f32.mrb[2].mxu0  ;;  %395 = vst [vmem:[%s220_s16 + $0x20] sm:$0xff] %v376_v15  ;;  %v625_v17 = vpop.f32.mrb[2].mxu1  ;;  %v412_v20 = vmul.f32 %v360_v14, %v360_v14  ;;  %v416_v29 = vmul.f32 %v376_v15, %v376_v15 }
  0xfd   : > { %394 = vst [vmem:[%s220_s16 + $0x18] sm:$0xff] %v621_v16  ;;  %v363_v18 = vpop.f32.mrb[3].mxu0  ;;  %398 = vst [vmem:[%s220_s16 + $0x38] sm:$0xff] %v625_v17  ;;  %v379_v19 = vpop.f32.mrb[3].mxu1  ;;  %v415_v26 = vmul.f32 %v621_v16, %v621_v16  ;;  %v419_v38 = vmul.f32 %v625_v17, %v625_v17 }
  0xfe   : > { %392 = vst [vmem:[%s220_s16 + $0x8] sm:$0xff] %v363_v18  ;;  %v399_v21 = vadd.f32 %v363_v18, %v360_v14  ;;  %v413_v22 = vmul.f32 %v363_v18, %v363_v18  ;;  %396 = vst [vmem:[%s220_s16 + $0x28] sm:$0xff] %v379_v19  ;;  %v417_v34 = vmul.f32 %v379_v19, %v379_v19 }
 0x100   : > { %v400_v24 = vadd.f32 %v620_v12, %v399_v21  ;;  %v420_v25 = vadd.f32 %v413_v22, %v412_v20 }
 0x102   : > { %v421_v27 = vadd.f32 %v420_v25, %v414_v23  ;;  %v401_v28 = vadd.f32 %v621_v16, %v400_v24 }
 0x104   : > { %v402_v30 = vadd.f32 %v401_v28, %v376_v15  ;;  %v422_v31 = vadd.f32 %v421_v27, %v415_v26 }
 0x106   : > { %v423_v32 = vadd.f32 %v422_v31, %v416_v29  ;;  %v403_v33 = vadd.f32 %v402_v30, %v379_v19 }
 0x108   : > { %v404_v36 = vadd.f32 %v624_v13, %v403_v33  ;;  %v424_v37 = vadd.f32 %v423_v32, %v417_v34 }
 0x10a   : > { %v405_v39 = vadd.f32 %v625_v17, %v404_v36  ;;  %v425_v40 = vadd.f32 %v424_v37, %v418_v35 }
 0x10c   : > { %v406_v41 = vrot.slane %v405_v39, 4  ;;  %v426_v42 = vadd.f32 %v425_v40, %v419_v38 }
 0x10e   : > { %v407_v43 = vadd.f32 %v406_v41, %v405_v39  ;;  %v427_v44 = vrot.slane %v426_v42, 4 }
 0x110   : > { %v408_v45 = vrot.slane %v407_v43, 2  ;;  %v428_v46 = vadd.f32 %v427_v44, %v426_v42 }
 0x112   : > { %v409_v47 = vadd.f32 %v408_v45, %v407_v43  ;;  %v429_v48 = vrot.slane %v428_v46, 2 }
 0x114   : > { %v410_v49 = vrot.slane %v409_v47, 1  ;;  %v430_v50 = vadd.f32 %v429_v48, %v428_v46 }
 0x116   : > { %v431_v51 = vrot.slane %v430_v50, 1  ;;  %v411_v52 = vadd.f32 %v410_v49, %v409_v47 }
 0x118   : > { %v432_v53 = vadd.f32 %v431_v51, %v430_v50 }
 0x11a   : > { %v434_v54 = vsel %vm433_vm0, %v411_v52, %v432_v53 }
 0x11b   : > { %435 = vst [vmem:[%s228_s20] sm:$0x3] %v434_v54 }
 0x11c PF: > { %s14_s14 = sadd.s32 1, %s700_s14   ;;  %s797_s12 = smov %s696_s13 }
 0x11d   : > { %p11_p5 = scmp.ge.s32.totalorder %s14_s14, 4   ;;  %s798_s13 = smov %s800_s15 }
 0x11f   :  { %13 = sbr.rel (!%p11_p5) target bundleno = 2 (0x2), region = 70 }

</bundles_post_ra>
